<compile_context>
chip_gen: v6e
topology: v6e:2x2x1
jax: 0.10.0
libtpu: 0.0.40
codegen_flags: <defaults>
</compile_context>

<pallas_src>
import functools

import jax
import jax.numpy as jnp
from jax import lax
from jax.experimental import pallas as pl
from jax.experimental.pallas import tpu as pltpu

_LANE_CANDIDATES = (1024, 512, 256, 128)   # lane-dense widths (multiples of 128)
_TARGET_BLOCK_BYTES = 2 << 20              # ~2 MiB per input per grid step
_STYLE_K_TILE = 512                        # K-slab width for gram accumulation


# ---------------------------------------------------------------------------
# Lane-dense tiled reduce of |a-b| or (a-b)^2.
# Each grid step writes its own (1, 1, LANE) partial sum: hot loop is pure VALU
# (no per-step scalar store / cross-lane reduce), the grid axis is "parallel"
# so megacore (v7x) can shard it, and the tiny final jnp.sum runs in plain XLA.
# ---------------------------------------------------------------------------
def _pairwise_partial_kernel(a_ref, b_ref, o_ref, *, op, rows, ragged):
    a = a_ref[...].astype(jnp.float32)     # upcast in-kernel (supports bf16 inputs)
    b = b_ref[...].astype(jnp.float32)
    d = a - b
    d = jnp.abs(d) if op == "abs" else d * d
    if ragged:
        tile = a.shape[0]
        row_ids = lax.broadcasted_iota(jnp.int32, a.shape, 0)
        valid = (pl.program_id(0) * tile + row_ids) < rows
        d = jnp.where(valid, d, 0.0)       # mask OOB rows of the last tile
    o_ref[...] = jnp.sum(d, axis=0, keepdims=True).reshape(o_ref.shape)


def _pairwise_reduce_sum(a, b, op):
    """sum(|a-b|) or sum((a-b)^2) over all elements."""
    total = a.size
    a_flat = a.reshape(-1)
    b_flat = b.reshape(-1)
    lane = next((c for c in _LANE_CANDIDATES if total % c == 0), None)
    if lane is None:
        # Rare ragged total: minimal pad to a lane multiple (zeros add 0 to both sums).
        lane = 128
        pad = (-total) % lane
        a_flat = jnp.pad(a_flat, (0, pad))
        b_flat = jnp.pad(b_flat, (0, pad))
    rows = a_flat.size // lane
    a2 = a_flat.reshape(rows, lane)        # lane-dense view
    b2 = b_flat.reshape(rows, lane)

    bytes_per_row = lane * 4
    target_rows = max(8, _TARGET_BLOCK_BYTES // bytes_per_row)
    if rows <= target_rows:
        tile = rows                         # one full block (full-dim block is legal)
    else:
        tile = (target_rows // 8) * 8       # sublane-aligned ~2 MiB tiles
    grid = pl.cdiv(rows, tile)
    ragged = (rows % tile) != 0             # last tile masked in-kernel (no host pad)

    kernel = functools.partial(_pairwise_partial_kernel, op=op, rows=rows, ragged=ragged)
    partials = pl.pallas_call(
        kernel,
        out_shape=jax.ShapeDtypeStruct((grid, 1, lane), jnp.float32),
        grid_spec=pltpu.PrefetchScalarGridSpec(
            num_scalar_prefetch=0,
            grid=(grid,),
            in_specs=[pl.BlockSpec((tile, lane), lambda i: (i, 0)),
                      pl.BlockSpec((tile, lane), lambda i: (i, 0))],
            out_specs=pl.BlockSpec((1, 1, lane), lambda i: (i, 0, 0)),
        ),
        compiler_params=pltpu.CompilerParams(dimension_semantics=("parallel",)),
    )(a2, b2)
    return jnp.sum(partials)


# ---------------------------------------------------------------------------
# Fused style + feature kernel for one layer, K-tiled over H*W.
# Per K-slab: d = mi-mo, s = mi+mo; accumulate X += d @ s^T (one MXU matmul,
# half the FLOPs of two grams since 0.5*(X+X^T) = mi mi^T - mo mo^T) and the
# per-column sums of d*d (feature loss), so fi/fo are read from HBM once.
# Outputs stay resident in VMEM across the K axis; the tiny (bd,bd) epilogue
# (symmetrize, normalize, square-sum, sqrt) runs in plain JAX.
# ---------------------------------------------------------------------------
def _style_feature_kernel(mi_ref, mo_ref, x_ref, sqcol_ref, *, cols, tk, ragged):
    k = pl.program_id(0)

    @pl.when(k == 0)
    def _():
        x_ref[...] = jnp.zeros_like(x_ref)
        sqcol_ref[...] = jnp.zeros_like(sqcol_ref)

    mi = mi_ref[...].astype(jnp.float32)   # upcast in-kernel, f32 accumulation
    mo = mo_ref[...].astype(jnp.float32)
    if ragged:
        col_ids = lax.broadcasted_iota(jnp.int32, mi.shape, 1)
        valid = (k * tk + col_ids) < cols
        d = jnp.where(valid, mi - mo, 0.0)
        s = jnp.where(valid, mi + mo, 0.0)
    else:
        d = mi - mo
        s = mi + mo

    x_ref[...] += jnp.einsum('ik,jk->ij', d, s, preferred_element_type=jnp.float32)
    sqcol_ref[...] += jnp.sum(d * d, axis=0, keepdims=True)


def _style_feature_sums(mi, mo, hw):
    """Returns (sum((gram_i - gram_o)^2), sum((mi - mo)^2)) for one layer."""
    bd, cols = mi.shape
    tk = _STYLE_K_TILE if cols > _STYLE_K_TILE else cols
    nk = pl.cdiv(cols, tk)
    ragged = (cols % tk) != 0
    kernel = functools.partial(_style_feature_kernel, cols=cols, tk=tk, ragged=ragged)
    x, sqcol = pl.pallas_call(
        kernel,
        out_shape=(jax.ShapeDtypeStruct((bd, bd), jnp.float32),
                   jax.ShapeDtypeStruct((1, tk), jnp.float32)),
        grid_spec=pltpu.PrefetchScalarGridSpec(
            num_scalar_prefetch=0,
            grid=(nk,),
            in_specs=[pl.BlockSpec((bd, tk), lambda k: (0, k)),
                      pl.BlockSpec((bd, tk), lambda k: (0, k))],
            out_specs=(pl.BlockSpec((bd, bd), lambda k: (0, 0)),
                       pl.BlockSpec((1, tk), lambda k: (0, 0))),
        ),
        compiler_params=pltpu.CompilerParams(dimension_semantics=("arbitrary",)),
    )(mi, mo)
    gram_diff = 0.5 * (x + x.T) / hw       # tiny (bd,bd) epilogue in plain JAX
    gram_sqsum = jnp.sum(gram_diff * gram_diff)
    feat_sqsum = jnp.sum(sqcol)
    return gram_sqsum, feat_sqsum


# ---------------------------------------------------------------------------
# Loss module (no learnable parameters in the PyTorch original)
# ---------------------------------------------------------------------------
class Loss:
    def __init__(self, height=36, width=60, coef_pixel=0.5, coef_perceptual=0.5,
                 coef_spatial=0.2, coef_warp_reg=0.25):
        self.height = height
        self.width = width
        self.coef_pixel = coef_pixel
        self.coef_perceptual = coef_perceptual
        self.coef_spatial = coef_spatial

    def pixel_loss(self, image_i_t, image_o):
        n = image_i_t.size
        return _pairwise_reduce_sum(image_i_t, image_o, "abs") / n

    def _layer_sums(self, fi, fo):
        b, c, h, w = fi.shape
        mi = fi.reshape(b * c, h * w)
        mo = fo.reshape(b * c, h * w)
        return _style_feature_sums(mi, mo, h * w)

    def feature_loss(self, feature_i, feature_o):
        if len(feature_i) == 0:
            return jnp.float32(0.0)
        total = jnp.float32(0.0)
        for fi, fo in zip(feature_i, feature_o):
            _, c, w, h = fi.shape
            _, feat_sqsum = self._layer_sums(fi, fo)
            total = total + jnp.sqrt(feat_sqsum) / (c * w * h)
        return total

    def style_loss(self, feature_i, feature_o):
        if len(feature_i) == 0:
            return jnp.float32(0.0)
        total = jnp.float32(0.0)
        for fi, fo in zip(feature_i, feature_o):
            _, c, _, _ = fi.shape
            gram_sqsum, _ = self._layer_sums(fi, fo)
            total = total + jnp.sqrt(gram_sqsum) / (c * c)
        return total

    def __call__(self, image_i_t, image_o, feature_i, feature_o):
        pixel = self.pixel_loss(image_i_t, image_o)
        feat = jnp.float32(0.0)
        style = jnp.float32(0.0)
        # Fused path: one kernel per layer yields both the feature and style sums.
        for fi, fo in zip(feature_i, feature_o):
            _, c, h, w = fi.shape
            gram_sqsum, feat_sqsum = self._layer_sums(fi, fo)
            feat = feat + jnp.sqrt(feat_sqsum) / (c * h * w)
            style = style + jnp.sqrt(gram_sqsum) / (c * c)
        return (self.coef_pixel * pixel
                + self.coef_perceptual * feat
                + self.coef_spatial * style)


# ---------------------------------------------------------------------------
# Pure-JAX reference (mirrors the PyTorch forward) for the correctness check.
# ---------------------------------------------------------------------------
def _reference(image_i_t, image_o, feature_i, feature_o,
               coef_pixel=0.5, coef_perceptual=0.5, coef_spatial=0.2):
    pixel = jnp.sum(jnp.abs(image_i_t - image_o)) / image_i_t.size
    feat = jnp.float32(0.0)
    style = jnp.float32(0.0)
    for fi, fo in zip(feature_i, feature_o):
        _, c, w, h = fi.shape
        feat = feat + jnp.sqrt(jnp.sum((fi - fo) ** 2)) / (c * w * h)
        b, cc, hh, ww = fi.shape
        mi = fi.reshape(b * cc, hh * ww)
        mo = fo.reshape(b * cc, hh * ww)
        gi = mi @ mi.T / (hh * ww)
        go = mo @ mo.T / (hh * ww)
        style = style + jnp.sqrt(jnp.sum((gi - go) ** 2)) / (cc * cc)
    return coef_pixel * pixel + coef_perceptual * feat + coef_spatial * style


if __name__ == "__main__":
    key = jax.random.PRNGKey(0)
    k1, k2, k3, k4, k5, k6 = jax.random.split(key, 6)
    image_i_t = jax.random.normal(k1, (2, 3, 16, 16), dtype=jnp.float32)
    image_o = jax.random.normal(k2, (2, 3, 16, 16), dtype=jnp.float32)
    feature_i = [jax.random.normal(k3, (2, 4, 16, 16), dtype=jnp.float32),
                 jax.random.normal(k4, (2, 8, 8, 8), dtype=jnp.float32)]
    feature_o = [jax.random.normal(k5, (2, 4, 16, 16), dtype=jnp.float32),
                 jax.random.normal(k6, (2, 8, 8, 8), dtype=jnp.float32)]

    loss_fn = Loss()
    out = jax.block_until_ready(loss_fn(image_i_t, image_o, feature_i, feature_o))

    ref = _reference(image_i_t, image_o, feature_i, feature_o)
    assert jnp.allclose(out, ref, rtol=5e-4, atol=1e-5), (out, ref)
    print("KERNEL_OK")
</pallas_src>

<mosaic_0001>
module attributes {stable_mosaic.version = 11 : i64} {
  func.func @_pairwise_partial_kernel(%arg0: i32, %arg1: memref<3x512xf32, #tpu.memory_space<vmem>>, %arg2: memref<3x512xf32, #tpu.memory_space<vmem>>, %arg3: memref<1x1x512xf32, #tpu.memory_space<vmem>>) attributes {dimension_semantics = [#tpu.dimension_semantics<parallel>], iteration_bounds = array<i64: 1>, scalar_prefetch = 0 : i64, scratch_operands = 0 : i64, tpu.core_type = #tpu.core_type<tc>, window_params = [{transform_indices = @transform_0, window_bounds = array<i64: 3, 512>}, {transform_indices = @transform_1, window_bounds = array<i64: 3, 512>}, {transform_indices = @transform_2, window_bounds = array<i64: 1, 1, 512>}]} {
    %c0 = arith.constant 0 : index
    %c0_0 = arith.constant 0 : index
    %0 = vector.load %arg1[%c0, %c0_0] : memref<3x512xf32, #tpu.memory_space<vmem>>, vector<3x512xf32>
    %c0_1 = arith.constant 0 : index
    %c0_2 = arith.constant 0 : index
    %1 = vector.load %arg2[%c0_1, %c0_2] : memref<3x512xf32, #tpu.memory_space<vmem>>, vector<3x512xf32>
    %2 = arith.subf %0, %1 : vector<3x512xf32>
    %3 = math.absf %2 : vector<3x512xf32>
    %cst = arith.constant dense<0.000000e+00> : vector<512xf32>
    %4 = vector.multi_reduction <add>, %3, %cst [0] : vector<3x512xf32> to vector<512xf32>
    %5 = vector.shape_cast %4 : vector<512xf32> to vector<1x512xf32>
    %6 = vector.shape_cast %5 : vector<1x512xf32> to vector<1x1x512xf32>
    %c0_3 = arith.constant 0 : index
    %c0_4 = arith.constant 0 : index
    %c0_5 = arith.constant 0 : index
    %7 = vector.load %arg3[%c0_3, %c0_4, %c0_5] : memref<1x1x512xf32, #tpu.memory_space<vmem>>, vector<1x1x512xf32>
    tpu.vector_store %arg3[%c0_3, %c0_4, %c0_5], %6 {strides = array<i32>} : memref<1x1x512xf32, #tpu.memory_space<vmem>>, vector<1x1x512xf32>,
    return
  }
  func.func @transform_0(%arg0: i32) -> (i32, i32) {
    %c0_i32 = arith.constant 0 : i32
    %c0_i32_0 = arith.constant 0 : i32
    return %arg0, %c0_i32 : i32, i32
  }
  func.func @transform_1(%arg0: i32) -> (i32, i32) {
    %c0_i32 = arith.constant 0 : i32
    %c0_i32_0 = arith.constant 0 : i32
    return %arg0, %c0_i32 : i32, i32
  }
  func.func @transform_2(%arg0: i32) -> (i32, i32, i32) {
    %c0_i32 = arith.constant 0 : i32
    %c0_i32_0 = arith.constant 0 : i32
    %c0_i32_1 = arith.constant 0 : i32
    return %arg0, %c0_i32, %c0_i32_0 : i32, i32, i32
  }
}

</mosaic_0001>

<bundles_post_ra>
// kernel: tpu_custom_call.1
= control target key start
LH: loop header
LB: loop body
LE: loop exit
PB: predicated region body
PF: predicated region fallthrough
CT: control target
= control target key end

     0   :  { %7 = vsyncpa [#allocation3], 0  ;;  %s227_s0 = inlined_call_operand.hbm [shape: f32[3,512], index: 0, kind: input, shape index: {}]   ;;  %s228_s1 = inlined_call_operand.hbm [shape: f32[3,512], index: 1, kind: input, shape index: {}]   ;;  %s229_s2 = inlined_call_operand.hbm [shape: f32[1,1,512], index: 2, kind: output, shape index: {}]  }
   0x1   :  { %8 = vsyncpa [#allocation6], 0 }
   0x2   :  { %9 = vsyncpa [#allocation4], 0  ;;  %s199_s9 = smov [#allocation2]   ;;  %s200_s11 = smov [#allocation5]  }
   0x3   :  { %s16_s10 = sshll.u32 %s199_s9, 4  ;;  %s26_s12 = sshll.u32 %s200_s11, 4  ;;  %s17_s10 = int_to_ptr.vmem [resolvable:$true] %s16_s10  ;;  %s27_s12 = int_to_ptr.vmem [resolvable:$true] %s26_s12 }
   0x4   :  { %s141_s13 = scalar_lea.vmem %s17_s10, 256  ;;  %p146_p1 = scmp.lt.s32.totalorder %s17_s10, %s17_s10 }
   0x5   :  { %p142_p0 = scmp.ne.s32.totalorder %s17_s10, %s141_s13  ;;  %p147_p2 = scmp.lt.s32.totalorder %s141_s13, %s141_s13 }
   0x7   :  { %p148_p3 = por %p147_p2, %p146_p1 }
   0x9   :  { %p149_p4 = pnand %p148_p3, %p142_p0 }
   0xb   :  { %152 = shalt.err (!%p149_p4)
}
   0xc   :  { %19 = dma.hbm_to_vmem [thread:$0]  %s227_s0, 256, %s17_s10, [#allocation3]  }
   0xd   :  { %s161_s16 = scalar_lea.vmem %s27_s12, 256  ;;  %p166_p6 = scmp.lt.s32.totalorder %s27_s12, %s27_s12 }
   0xe   :  { %p162_p5 = scmp.ne.s32.totalorder %s27_s12, %s161_s16  ;;  %p167_p7 = scmp.lt.s32.totalorder %s161_s16, %s161_s16 }
  0x10   :  { %p168_p8 = por %p167_p7, %p166_p6 }
  0x12   :  { %p169_p9 = pnand %p168_p8, %p162_p5 }
  0x14   :  { %172 = shalt.err (!%p169_p9)
}
  0x15   :  { %29 = dma.hbm_to_vmem [thread:$0]  %s228_s1, 256, %s27_s12, [#allocation6]  }
  0x16   :  { %193 = dma.done.wait [#allocation3], 256  }
  0x17   :  { %194 = vsyncadd [#allocation3], 4294967040 }
  0x18   :  { %195 = dma.done.wait [#allocation6], 256  }
  0x19   :  { %196 = vsyncadd [#allocation6], 4294967040  ;;  %v36_v0 = vld [vmem:[#allocation2] sm:$0x77]  ;;  %v37_v1 = vld [vmem:[#allocation2 + $0x8] sm:$0x77]  ;;  %v88_v24 = vlaneseq }
  0x1a   :  { %v38_v2 = vld [vmem:[#allocation5] sm:$0x77]  ;;  %v39_v3 = vld [vmem:[#allocation5 + $0x8] sm:$0x77]  ;;  %vm50_vm0 = vcmask 1042432   ;;  %s202_s0 = smov [#allocation7]  }
  0x1b   :  { %v40_v4 = vsub.f32 %v36_v0, %v38_v2  ;;  %v41_v5 = vsub.f32 %v37_v1, %v39_v3  ;;  %v201_v22 = vmov 1966171168   ;;  %v89_v34 = vshrl.u32 %v88_v24, 7  ;;  %s119_s1 = sshll.u32 %s202_s0, 4  ;;  %s120_s1 = int_to_ptr.vmem [resolvable:$true] %s119_s1 }
  0x1c   :  { %v86_v23 = vunpack.c.l.s4 %v201_v22  ;;  %vm110_vm1 = vcmp.lt.s32.totalorder %v88_v24, 512  ;;  %s173_s19 = scalar_lea.vmem %s120_s1, 64  ;;  %p178_p11 = scmp.lt.s32.totalorder %s120_s1, %s120_s1 }
  0x1d   :  { %v42_v6 = vand.u32 2147483647, %v40_v4  ;;  %v43_v7 = vand.u32 2147483647, %v41_v5  ;;  %p174_p10 = scmp.ne.s32.totalorder %s120_s1, %s173_s19  ;;  %p179_p12 = scmp.lt.s32.totalorder %s173_s19, %s173_s19 }
  0x1e   :  { %v87_v33 = vunpack.c.0.s8 %v86_v23 }
  0x1f   :  { %v46_v8 = vcombine.high %v42_v6, %v42_v6  ;;  %v51_v9 = vsel %vm50_vm0, %v42_v6, 0.0  ;;  %v47_v10 = vcombine.high %v43_v7, %v43_v7  ;;  %v65_v12 = vsel %vm50_vm0, %v43_v7, 0.0  ;;  %p180_p13 = por %p179_p12, %p178_p11 }
  0x20   :  { %v52_v11 = vrot.slane %v51_v9, 4  ;;  %v66_v14 = vrot.slane %v65_v12, 4  ;;  %v90_v42 = vsub.s32 %v87_v33, %v89_v34 }
  0x21   :  { %v58_v13 = vsel %vm50_vm0, %v46_v8, 0.0  ;;  %v72_v17 = vsel %vm50_vm0, %v47_v10, 0.0  ;;  %p181_p0 = pnand %p180_p13, %p174_p10 }
  0x22   :  { %v53_v15 = vadd.f32 %v52_v11, %v51_v9  ;;  %v59_v16 = vrot.slane %v58_v13, 4  ;;  %v67_v18 = vadd.f32 %v66_v14, %v65_v12  ;;  %v73_v19 = vrot.slane %v72_v17, 4 }
  0x24   :  { %v54_v20 = vrot.slane %v53_v15, 2  ;;  %v60_v21 = vadd.f32 %v59_v16, %v58_v13  ;;  %v68_v25 = vrot.slane %v67_v18, 2  ;;  %v74_v26 = vadd.f32 %v73_v19, %v72_v17 }
  0x26   :  { %v55_v27 = vadd.f32 %v54_v20, %v53_v15  ;;  %v61_v28 = vrot.slane %v60_v21, 2  ;;  %v69_v29 = vadd.f32 %v68_v25, %v67_v18  ;;  %v75_v30 = vrot.slane %v74_v26, 2 }
  0x28   :  { %v56_v31 = vrot.slane %v55_v27, 1  ;;  %v62_v32 = vadd.f32 %v61_v28, %v60_v21  ;;  %v70_v35 = vrot.slane %v69_v29, 1  ;;  %v76_v36 = vadd.f32 %v75_v30, %v74_v26 }
  0x2a   :  { %v57_v37 = vadd.f32 %v56_v31, %v55_v27  ;;  %v63_v38 = vrot.slane %v62_v32, 1  ;;  %v71_v39 = vadd.f32 %v70_v35, %v69_v29  ;;  %v77_v40 = vrot.slane %v76_v36, 1 }
  0x2c   :  { %v64_v41 = vadd.f32 %v63_v38, %v62_v32  ;;  %v78_v43 = vadd.f32 %v77_v40, %v76_v36 }
  0x2e   :  { %v83_v44 = vcombine.low %v57_v37, %v64_v41  ;;  %v84_v45 = vcombine.low %v71_v39, %v78_v43 }
  0x30   :  { %v91_v46 = vrot.slane %v83_v44, %v90_v42  ;;  %v98_v47 = vrot.slane %v84_v45, %v90_v42 }
  0x32   :  { %v99_v48 = vcombine.low %v91_v46, %v98_v47 }
  0x34   :  { %v106_v49 = vrot.slane %v99_v48, %v90_v42 }
  0x36   :  { %112 = vst.msk [vmem:[#allocation7] sm:$0xf] %vm110_vm1, %v106_v49 }
  0x37   :  { %184 = shalt.err (!%p181_p0)
}
  0x38   :  { %122 = dma.vmem_to_hbm [thread:$0]  %s120_s1, 64, %s229_s2, [#allocation4]  }
  0x39   :  { %197 = dma.done.wait [#allocation4], 64  }
  0x3a   :  { %198 = vsyncadd [#allocation4], 4294967232 }
  0x3b   :  { %126 = vsyncpa [#allocation3], 1 }
  0x3c   :  { %127 = vsyncpa [#allocation6], 1 }
  0x3d   :  { %128 = vsyncpa [#allocation4], 1 }

</bundles_post_ra>
